<compile_context>
chip_gen: v7x
topology: tpu7x:2x2x1
jax: 0.10.0
libtpu: 0.0.40
codegen_flags: <defaults>
</compile_context>

<pallas_src>
import functools

import jax
import jax.numpy as jnp
from jax.experimental import pallas as pl
from jax.experimental.pallas import tpu as pltpu

_NUM_MOD = 4      # dopamine, serotonin, norepinephrine, acetylcholine
_LVL_PAD = 128    # the 4-wide modulator head padded to a lane-dense 128 columns


# ----------------------------------------------------------------------------- helpers
def _pick_batch_tile(batch, prefer=512):
    """Largest batch tile that divides B and respects the sublane-of-8 rule."""
    if batch <= prefer:
        return batch                       # one block covering the full batch dim
    for t in (prefer, 256, 128, 64, 32, 16, 8):
        if batch % t == 0:
            return t
    return batch  # TODO(synk): pad ragged batch sizes instead of one giant block


def _vmem_limit(tile_bytes, resident_bytes):
    """Scoped VMEM budget: resident weights + 2x double-buffered tiles + headroom."""
    need = resident_bytes + 2 * tile_bytes + (2 << 20)
    return int(min(max(need, 4 << 20), 64 << 20))   # cap at v7x per-core VMEM


# ----------------------------------------------------------------------------- kernel 1
def _levels_kernel(
    blend_ref,                                  # (1, 1) f32 in SMEM (whole-batch blend)
    x_ref, reward_ref, cur_ref,                 # (TB, H), (TB, 1), (TB, 128)
    w1x_ref, w1r_ref, b1_ref,                   # (H, H) bf16, (1, H) f32, (1, H) f32
    w2_ref, b2_ref,                             # (H, H//2) bf16, (1, H//2) f32
    w3_ref, b3_ref,                             # (H//2, 128) bf16 (zero-padded), (1, 128) f32
    lvl_ref,                                    # (TB, 128) f32 out (cols 0..3 are real)
    *,
    reward_decay,
):
    x = x_ref[...]
    r = reward_ref[...]
    blend = blend_ref[0, 0]

    # modulator_network: Linear(H+1->H) -> ReLU -> Linear(H->H/2) -> ReLU
    #                    -> Linear(H/2->4) -> Sigmoid      (bf16 operands, f32 accum)
    xb = x.astype(jnp.bfloat16)
    h1 = jnp.dot(xb, w1x_ref[...], preferred_element_type=jnp.float32)
    h1 = h1 + r * w1r_ref[...] + b1_ref[...]    # r * W1r == (r-column of cat) @ W1
    h1 = jnp.maximum(h1, 0.0)

    h2 = jnp.dot(h1.astype(jnp.bfloat16), w2_ref[...],
                 preferred_element_type=jnp.float32) + b2_ref[...]
    h2 = jnp.maximum(h2, 0.0)

    logits = jnp.dot(h2.astype(jnp.bfloat16), w3_ref[...],
                     preferred_element_type=jnp.float32) + b3_ref[...]
    new_levels = jax.nn.sigmoid(logits)         # (TB, 128); padded cols are junk

    # Level update: decay + adaptive blend (global scalar) + clamp.
    decayed = cur_ref[...] * reward_decay
    updated = (1.0 - blend) * decayed + blend * new_levels
    lvl_ref[...] = jnp.clip(updated, 0.2, 0.8)


# ----------------------------------------------------------------------------- kernel 2
def _modulate_kernel(
    reg_ref,                                    # (1, 1) f32 in SMEM (global reg factor)
    x_ref, noise_ref, lvl_ref,                  # (TB, H), (TB, H), (TB, 128)
    out_ref,                                    # (TB, H)
    *,
    dopamine_scale, serotonin_scale, norepinephrine_scale, acetylcholine_scale,
):
    x = x_ref[...]
    lvl = lvl_ref[...]
    reg = reg_ref[0, 0]

    dop = lvl[:, 0:1] * dopamine_scale
    ser = lvl[:, 1:2] * serotonin_scale
    nor = lvl[:, 2:3] * norepinephrine_scale
    ace = lvl[:, 3:4] * acetylcholine_scale

    # sign(x) * abs(x) == x exactly, so fold both linear terms into one multiply.
    out = (
        x * (1.0 + 0.15 * dop + 0.1 * nor)
        + (0.1 + 0.05 * reg) * ser * jnp.tanh(x)
        + 0.1 * ace * jax.nn.sigmoid(x)
        + (0.05 * reg) * noise_ref[...]         # torch.randn_like(x) noise, passed in
    )
    out_ref[...] = out


# ----------------------------------------------------------------------------- wrapper
def reward_modulator_forward(
    x, reward, current_levels, params, noise,
    *,
    reward_decay=0.95,
    dopamine_scale=1.0,
    serotonin_scale=1.0,
    norepinephrine_scale=1.0,
    acetylcholine_scale=1.0,
    batch_tile=512,
):
    """x: (B, H) f32, reward: (B, 1) f32, current_levels: (B, 4) f32."""
    B, H = x.shape
    w1x, w1r, b1, w2, b2, w3p, b3p = params

    TB = _pick_batch_tile(B, batch_tile)
    nb = pl.cdiv(B, TB)

    # --- whole-batch scalars, computed once in plain JAX (tiny), fed via SMEM -----
    reward_mag = jnp.mean(jnp.abs(reward))
    blend = jnp.clip(0.3 + 0.3 * reward_mag, 0.2, 0.5)
    blend2d = blend.reshape(1, 1).astype(jnp.float32)

    # Pad (B, 4) levels to a lane-dense (B, 128) slab (extra cols are dont-care).
    cur_padded = jnp.pad(current_levels.astype(jnp.float32),
                         ((0, 0), (0, _LVL_PAD - _NUM_MOD)))

    # --- kernel 1: MLP + level update, batch-tiled, weights resident --------------
    resident = sum(int(a.size) * a.dtype.itemsize
                   for a in (w1x, w1r, b1, w2, b2, w3p, b3p))
    tile_lvl = TB * (H * 4 + 4 + _LVL_PAD * 4 + _LVL_PAD * 4)

    lvl_padded = pl.pallas_call(
        functools.partial(_levels_kernel, reward_decay=reward_decay),
        out_shape=jax.ShapeDtypeStruct((B, _LVL_PAD), jnp.float32),
        grid=(nb,),
        in_specs=[
            pl.BlockSpec(memory_space=pltpu.MemorySpace.SMEM),        # blend scalar
            pl.BlockSpec((TB, H), lambda i: (i, 0)),                  # x tile
            pl.BlockSpec((TB, 1), lambda i: (i, 0)),                  # reward tile
            pl.BlockSpec((TB, _LVL_PAD), lambda i: (i, 0)),           # current levels
            pl.BlockSpec((H, H), lambda i: (0, 0)),                   # w1x (resident)
            pl.BlockSpec((1, H), lambda i: (0, 0)),                   # w1r
            pl.BlockSpec((1, H), lambda i: (0, 0)),                   # b1
            pl.BlockSpec((H, H // 2), lambda i: (0, 0)),              # w2
            pl.BlockSpec((1, H // 2), lambda i: (0, 0)),              # b2
            pl.BlockSpec((H // 2, _LVL_PAD), lambda i: (0, 0)),       # w3 (padded)
            pl.BlockSpec((1, _LVL_PAD), lambda i: (0, 0)),            # b3 (padded)
        ],
        out_specs=pl.BlockSpec((TB, _LVL_PAD), lambda i: (i, 0)),
        compiler_params=pltpu.CompilerParams(
            dimension_semantics=("parallel",),
            vmem_limit_bytes=_vmem_limit(tile_lvl, resident),
        ),
    )(blend2d, x, reward, cur_padded, w1x, w1r, b1, w2, b2, w3p, b3p)

    updated_levels = lvl_padded[:, :_NUM_MOD]

    # Whole-batch regularization factor (depends on updated dopamine levels).
    reg = jax.nn.sigmoid(jnp.mean(updated_levels[:, 0] * dopamine_scale) * 5.0 - 2.0)
    reg2d = reg.reshape(1, 1).astype(jnp.float32)

    # --- kernel 2: wide element-wise modulation, batch-tiled & pipelined ----------
    tile_mod = TB * (H * 4 * 3 + _LVL_PAD * 4)

    modulated = pl.pallas_call(
        functools.partial(
            _modulate_kernel,
            dopamine_scale=dopamine_scale,
            serotonin_scale=serotonin_scale,
            norepinephrine_scale=norepinephrine_scale,
            acetylcholine_scale=acetylcholine_scale,
        ),
        out_shape=jax.ShapeDtypeStruct((B, H), jnp.float32),
        grid=(nb,),
        in_specs=[
            pl.BlockSpec(memory_space=pltpu.MemorySpace.SMEM),        # reg scalar
            pl.BlockSpec((TB, H), lambda i: (i, 0)),                  # x tile
            pl.BlockSpec((TB, H), lambda i: (i, 0)),                  # noise tile
            pl.BlockSpec((TB, _LVL_PAD), lambda i: (i, 0)),           # padded levels
        ],
        out_specs=pl.BlockSpec((TB, H), lambda i: (i, 0)),
        compiler_params=pltpu.CompilerParams(
            dimension_semantics=("parallel",),
            vmem_limit_bytes=_vmem_limit(tile_mod, 0),
        ),
    )(reg2d, x, noise, lvl_padded)

    return modulated, updated_levels


# ----------------------------------------------------------------------------- params
def init_params(key, hidden_size):
    """PyTorch-style uniform init. Weights stored as (in, out); matmul weights bf16.

    The Linear(H+1, H) weight is split into w1x (acts on x) and w1r (acts on the
    reward column); the 4-wide head is zero-padded to 128 output columns.
    """
    def linear(k, fan_in, fan_out):
        kw, kb = jax.random.split(k)
        bound = 1.0 / (fan_in ** 0.5)
        w = jax.random.uniform(kw, (fan_in, fan_out), jnp.float32, -bound, bound)
        b = jax.random.uniform(kb, (1, fan_out), jnp.float32, -bound, bound)
        return w, b

    H = hidden_size
    k1, k2, k3 = jax.random.split(key, 3)
    w1_full, b1 = linear(k1, H + 1, H)                  # Linear(H+1, H)
    w1x = w1_full[:H, :].astype(jnp.bfloat16)           # MXU operand -> bf16
    w1r = w1_full[H:H + 1, :]                           # used on the VPU -> f32
    w2, b2 = linear(k2, H, H // 2)                      # Linear(H, H//2)
    w3, b3 = linear(k3, H // 2, _NUM_MOD)               # Linear(H//2, 4)
    w3p = jnp.pad(w3, ((0, 0), (0, _LVL_PAD - _NUM_MOD))).astype(jnp.bfloat16)
    b3p = jnp.pad(b3, ((0, 0), (0, _LVL_PAD - _NUM_MOD)))
    return (w1x, w1r, b1, w2.astype(jnp.bfloat16), b2, w3p, b3p)


# ----------------------------------------------------------------------------- demo
if __name__ == "__main__":
    batch_size = 2
    hidden_size = 32

    key = jax.random.PRNGKey(0)
    kx, kr, kn, kp = jax.random.split(key, 4)

    x = jax.random.normal(kx, (batch_size, hidden_size), dtype=jnp.float32)
    reward = jax.random.normal(kr, (batch_size, 1), dtype=jnp.float32)
    # init_levels(): ones(B, 4) * 0.5
    current_levels = jnp.full((batch_size, _NUM_MOD), 0.5, dtype=jnp.float32)
    # torch.randn_like(x) equivalent, drawn outside and fused inside the kernel.
    # TODO(synk): optionally generate in-kernel via pltpu.prng_random_bits to save
    #             HBM bandwidth (changes the RNG stream vs torch.randn_like).
    noise = jax.random.normal(kn, (batch_size, hidden_size), dtype=jnp.float32)

    params = init_params(kp, hidden_size)

    modulated_output, updated_levels = reward_modulator_forward(
        x, reward, current_levels, params, noise,
        reward_decay=0.95,
        dopamine_scale=1.0,
        serotonin_scale=1.0,
        norepinephrine_scale=1.0,
        acetylcholine_scale=1.0,
    )
    jax.block_until_ready((modulated_output, updated_levels))

    assert modulated_output.shape == (batch_size, hidden_size)
    assert updated_levels.shape == (batch_size, _NUM_MOD)
    assert bool(jnp.all(jnp.isfinite(modulated_output)))
    assert bool(jnp.all(updated_levels >= 0.2)) and bool(jnp.all(updated_levels <= 0.8))

    print("KERNEL_OK")
</pallas_src>

<mosaic_0001>
module attributes {stable_mosaic.version = 11 : i64} {
  func.func @_levels_kernel(%arg0: i32, %arg1: memref<1x1xf32, #tpu.memory_space<smem>>, %arg2: memref<2x32xf32, #tpu.memory_space<vmem>>, %arg3: memref<2x1xf32, #tpu.memory_space<vmem>>, %arg4: memref<2x128xf32, #tpu.memory_space<vmem>>, %arg5: memref<32x32xbf16, #tpu.memory_space<vmem>>, %arg6: memref<1x32xf32, #tpu.memory_space<vmem>>, %arg7: memref<1x32xf32, #tpu.memory_space<vmem>>, %arg8: memref<32x16xbf16, #tpu.memory_space<vmem>>, %arg9: memref<1x16xf32, #tpu.memory_space<vmem>>, %arg10: memref<16x128xbf16, #tpu.memory_space<vmem>>, %arg11: memref<1x128xf32, #tpu.memory_space<vmem>>, %arg12: memref<2x128xf32, #tpu.memory_space<vmem>>) attributes {dimension_semantics = [#tpu.dimension_semantics<parallel>], iteration_bounds = array<i64: 1>, scalar_prefetch = 0 : i64, scratch_operands = 0 : i64, tpu.core_type = #tpu.core_type<tc>, window_params = [{transform_indices = @transform_0, window_bounds = array<i64: 1, 1>}, {transform_indices = @transform_1, window_bounds = array<i64: 2, 32>}, {transform_indices = @transform_2, window_bounds = array<i64: 2, 1>}, {transform_indices = @transform_3, window_bounds = array<i64: 2, 128>}, {pipeline_mode = #tpu.pipeline_mode<synchronous>, transform_indices = @transform_4, window_bounds = array<i64: 32, 32>}, {pipeline_mode = #tpu.pipeline_mode<synchronous>, transform_indices = @transform_5, window_bounds = array<i64: 1, 32>}, {pipeline_mode = #tpu.pipeline_mode<synchronous>, transform_indices = @transform_6, window_bounds = array<i64: 1, 32>}, {pipeline_mode = #tpu.pipeline_mode<synchronous>, transform_indices = @transform_7, window_bounds = array<i64: 32, 16>}, {pipeline_mode = #tpu.pipeline_mode<synchronous>, transform_indices = @transform_8, window_bounds = array<i64: 1, 16>}, {pipeline_mode = #tpu.pipeline_mode<synchronous>, transform_indices = @transform_9, window_bounds = array<i64: 16, 128>}, {pipeline_mode = #tpu.pipeline_mode<synchronous>, transform_indices = @transform_10, window_bounds = array<i64: 1, 128>}, {transform_indices = @transform_11, window_bounds = array<i64: 2, 128>}]} {
    %c0 = arith.constant 0 : index
    %c0_0 = arith.constant 0 : index
    %0 = vector.load %arg2[%c0, %c0_0] : memref<2x32xf32, #tpu.memory_space<vmem>>, vector<2x32xf32>
    %c0_1 = arith.constant 0 : index
    %c0_2 = arith.constant 0 : index
    %1 = vector.load %arg3[%c0_1, %c0_2] : memref<2x1xf32, #tpu.memory_space<vmem>>, vector<2x1xf32>
    %c0_3 = arith.constant 0 : index
    %c0_4 = arith.constant 0 : index
    %2 = memref.load %arg1[%c0_3, %c0_4] : memref<1x1xf32, #tpu.memory_space<smem>>
    %3 = arith.truncf %0 : vector<2x32xf32> to vector<2x32xbf16>
    %c0_5 = arith.constant 0 : index
    %c0_6 = arith.constant 0 : index
    %4 = vector.load %arg5[%c0_5, %c0_6] : memref<32x32xbf16, #tpu.memory_space<vmem>>, vector<32x32xbf16>
    %cst = arith.constant dense<0.000000e+00> : vector<2x32xf32>
    %5 = tpu.matmul %3, %4, %cst {dimension_numbers = #tpu.dot_dimension_numbers<[1], [0], [0], [1], [0, 0, 1, 1], [], []>} : vector<2x32xbf16>, vector<32x32xbf16>, vector<2x32xf32> -> vector<2x32xf32>
    %c0_7 = arith.constant 0 : index
    %c0_8 = arith.constant 0 : index
    %6 = vector.load %arg6[%c0_7, %c0_8] : memref<1x32xf32, #tpu.memory_space<vmem>>, vector<1x32xf32>
    %7 = vector.broadcast %1 : vector<2x1xf32> to vector<2x32xf32>
    %8 = vector.broadcast %6 : vector<1x32xf32> to vector<2x32xf32>
    %9 = arith.mulf %7, %8 : vector<2x32xf32>
    %10 = arith.addf %5, %9 : vector<2x32xf32>
    %c0_9 = arith.constant 0 : index
    %c0_10 = arith.constant 0 : index
    %11 = vector.load %arg7[%c0_9, %c0_10] : memref<1x32xf32, #tpu.memory_space<vmem>>, vector<1x32xf32>
    %12 = vector.broadcast %11 : vector<1x32xf32> to vector<2x32xf32>
    %13 = arith.addf %10, %12 : vector<2x32xf32>
    %cst_11 = arith.constant 0.000000e+00 : f32
    %14 = vector.broadcast %cst_11 : f32 to vector<2x32xf32>
    %15 = arith.maximumf %13, %14 : vector<2x32xf32>
    %16 = arith.truncf %15 : vector<2x32xf32> to vector<2x32xbf16>
    %c0_12 = arith.constant 0 : index
    %c0_13 = arith.constant 0 : index
    %17 = vector.load %arg8[%c0_12, %c0_13] : memref<32x16xbf16, #tpu.memory_space<vmem>>, vector<32x16xbf16>
    %cst_14 = arith.constant dense<0.000000e+00> : vector<2x16xf32>
    %18 = tpu.matmul %16, %17, %cst_14 {dimension_numbers = #tpu.dot_dimension_numbers<[1], [0], [0], [1], [0, 0, 1, 1], [], []>} : vector<2x32xbf16>, vector<32x16xbf16>, vector<2x16xf32> -> vector<2x16xf32>
    %c0_15 = arith.constant 0 : index
    %c0_16 = arith.constant 0 : index
    %19 = vector.load %arg9[%c0_15, %c0_16] : memref<1x16xf32, #tpu.memory_space<vmem>>, vector<1x16xf32>
    %20 = vector.broadcast %19 : vector<1x16xf32> to vector<2x16xf32>
    %21 = arith.addf %18, %20 : vector<2x16xf32>
    %cst_17 = arith.constant 0.000000e+00 : f32
    %22 = vector.broadcast %cst_17 : f32 to vector<2x16xf32>
    %23 = arith.maximumf %21, %22 : vector<2x16xf32>
    %24 = arith.truncf %23 : vector<2x16xf32> to vector<2x16xbf16>
    %c0_18 = arith.constant 0 : index
    %c0_19 = arith.constant 0 : index
    %25 = vector.load %arg10[%c0_18, %c0_19] : memref<16x128xbf16, #tpu.memory_space<vmem>>, vector<16x128xbf16>
    %cst_20 = arith.constant dense<0.000000e+00> : vector<2x128xf32>
    %26 = tpu.matmul %24, %25, %cst_20 {dimension_numbers = #tpu.dot_dimension_numbers<[1], [0], [0], [1], [0, 0, 1, 1], [], []>} : vector<2x16xbf16>, vector<16x128xbf16>, vector<2x128xf32> -> vector<2x128xf32>
    %c0_21 = arith.constant 0 : index
    %c0_22 = arith.constant 0 : index
    %27 = vector.load %arg11[%c0_21, %c0_22] : memref<1x128xf32, #tpu.memory_space<vmem>>, vector<1x128xf32>
    %28 = vector.broadcast %27 : vector<1x128xf32> to vector<2x128xf32>
    %29 = arith.addf %26, %28 : vector<2x128xf32>
    %30 = arith.negf %29 : vector<2x128xf32>
    %31 = math.exp %30 : vector<2x128xf32>
    %cst_23 = arith.constant 1.000000e+00 : f32
    %32 = vector.broadcast %cst_23 : f32 to vector<2x128xf32>
    %33 = arith.addf %32, %31 : vector<2x128xf32>
    %34 = arith.divf %32, %33 : vector<2x128xf32>
    %c0_24 = arith.constant 0 : index
    %c0_25 = arith.constant 0 : index
    %35 = vector.load %arg4[%c0_24, %c0_25] : memref<2x128xf32, #tpu.memory_space<vmem>>, vector<2x128xf32>
    %cst_26 = arith.constant 0.949999988 : f32
    %36 = vector.broadcast %cst_26 : f32 to vector<2x128xf32>
    %37 = arith.mulf %35, %36 : vector<2x128xf32>
    %cst_27 = arith.constant 1.000000e+00 : f32
    %38 = arith.subf %cst_27, %2 : f32
    %39 = vector.broadcast %38 : f32 to vector<2x128xf32>
    %40 = arith.mulf %39, %37 : vector<2x128xf32>
    %41 = vector.broadcast %2 : f32 to vector<2x128xf32>
    %42 = arith.mulf %41, %34 : vector<2x128xf32>
    %43 = arith.addf %40, %42 : vector<2x128xf32>
    %cst_28 = arith.constant 2.000000e-01 : f32
    %cst_29 = arith.constant 8.000000e-01 : f32
    %44 = vector.broadcast %cst_28 : f32 to vector<2x128xf32>
    %45 = arith.maximumf %44, %43 : vector<2x128xf32>
    %46 = vector.broadcast %cst_29 : f32 to vector<2x128xf32>
    %47 = arith.minimumf %46, %45 : vector<2x128xf32>
    %c0_30 = arith.constant 0 : index
    %c0_31 = arith.constant 0 : index
    %48 = vector.load %arg12[%c0_30, %c0_31] : memref<2x128xf32, #tpu.memory_space<vmem>>, vector<2x128xf32>
    tpu.vector_store %arg12[%c0_30, %c0_31], %47 {strides = array<i32>} : memref<2x128xf32, #tpu.memory_space<vmem>>, vector<2x128xf32>,
    return
  }
  func.func @transform_0(%arg0: i32) -> (i32, i32) {
    %c0_i32 = arith.constant 0 : i32
    %c0_i32_0 = arith.constant 0 : i32
    %c0_i32_1 = arith.constant 0 : i32
    return %c0_i32, %c0_i32_0 : i32, i32
  }
  func.func @transform_1(%arg0: i32) -> (i32, i32) {
    %c0_i32 = arith.constant 0 : i32
    %c0_i32_0 = arith.constant 0 : i32
    return %arg0, %c0_i32 : i32, i32
  }
  func.func @transform_2(%arg0: i32) -> (i32, i32) {
    %c0_i32 = arith.constant 0 : i32
    %c0_i32_0 = arith.constant 0 : i32
    return %arg0, %c0_i32 : i32, i32
  }
  func.func @transform_3(%arg0: i32) -> (i32, i32) {
    %c0_i32 = arith.constant 0 : i32
    %c0_i32_0 = arith.constant 0 : i32
    return %arg0, %c0_i32 : i32, i32
  }
  func.func @transform_4(%arg0: i32) -> (i32, i32) {
    %c0_i32 = arith.constant 0 : i32
    %c0_i32_0 = arith.constant 0 : i32
    %c0_i32_1 = arith.constant 0 : i32
    return %c0_i32, %c0_i32_0 : i32, i32
  }
  func.func @transform_5(%arg0: i32) -> (i32, i32) {
    %c0_i32 = arith.constant 0 : i32
    %c0_i32_0 = arith.constant 0 : i32
    %c0_i32_1 = arith.constant 0 : i32
    return %c0_i32, %c0_i32_0 : i32, i32
  }
  func.func @transform_6(%arg0: i32) -> (i32, i32) {
    %c0_i32 = arith.constant 0 : i32
    %c0_i32_0 = arith.constant 0 : i32
    %c0_i32_1 = arith.constant 0 : i32
    return %c0_i32, %c0_i32_0 : i32, i32
  }
  func.func @transform_7(%arg0: i32) -> (i32, i32) {
    %c0_i32 = arith.constant 0 : i32
    %c0_i32_0 = arith.constant 0 : i32
    %c0_i32_1 = arith.constant 0 : i32
    return %c0_i32, %c0_i32_0 : i32, i32
  }
  func.func @transform_8(%arg0: i32) -> (i32, i32) {
    %c0_i32 = arith.constant 0 : i32
    %c0_i32_0 = arith.constant 0 : i32
    %c0_i32_1 = arith.constant 0 : i32
    return %c0_i32, %c0_i32_0 : i32, i32
  }
  func.func @transform_9(%arg0: i32) -> (i32, i32) {
    %c0_i32 = arith.constant 0 : i32
    %c0_i32_0 = arith.constant 0 : i32
    %c0_i32_1 = arith.constant 0 : i32
    return %c0_i32, %c0_i32_0 : i32, i32
  }
  func.func @transform_10(%arg0: i32) -> (i32, i32) {
    %c0_i32 = arith.constant 0 : i32
    %c0_i32_0 = arith.constant 0 : i32
    %c0_i32_1 = arith.constant 0 : i32
    return %c0_i32, %c0_i32_0 : i32, i32
  }
  func.func @transform_11(%arg0: i32) -> (i32, i32) {
    %c0_i32 = arith.constant 0 : i32
    %c0_i32_0 = arith.constant 0 : i32
    return %arg0, %c0_i32 : i32, i32
  }
}

</mosaic_0001>

<bundles_post_ra>
// kernel: tpu_custom_call.1
= control target key start
LH: loop header
LB: loop body
LE: loop exit
PB: predicated region body
PF: predicated region fallthrough
CT: control target
= control target key end

     0   :  { %v367_v1 = vmov 0.0   ;;  %vm368_vm0 = vmmov 0   ;;  %v369_v5 = vmov 0   ;;  %s487_s0 = inlined_call_operand.<no memory space> [shape: f32[1,1], index: 0, kind: input, shape index: {}]   ;;  %s488_s1 = inlined_call_operand.vmem [shape: f32[2,32], index: 1, kind: input, shape index: {}]   ;;  %s489_s2 = inlined_call_operand.vmem [shape: f32[2,1], index: 2, kind: input, shape index: {}]   ;;  %s490_s3 = inlined_call_operand.vmem [shape: f32[2,128], index: 3, kind: input, shape index: {}]   ;;  %s491_s4 = inlined_call_operand.vmem [shape: bf16[32,32], index: 4, kind: input, shape index: {}]   ;;  %s492_s5 = inlined_call_operand.vmem [shape: f32[1,32], index: 5, kind: input, shape index: {}]   ;;  %s493_s6 = inlined_call_operand.vmem [shape: f32[1,32], index: 6, kind: input, shape index: {}]   ;;  %s494_s7 = inlined_call_operand.vmem [shape: bf16[32,16], index: 7, kind: input, shape index: {}]   ;;  %s495_s8 = inlined_call_operand.vmem [shape: f32[1,16], index: 8, kind: input, shape index: {}]   ;;  %s496_s9 = inlined_call_operand.vmem [shape: bf16[16,128], index: 9, kind: input, shape index: {}]   ;;  %s497_s10 = inlined_call_operand.vmem [shape: f32[1,128], index: 10, kind: input, shape index: {}]   ;;  %s498_s11 = inlined_call_operand.hbm [shape: f32[2,128], index: 11, kind: output, shape index: {}]  }
   0x1   :  { %v334_v0 = vld [vmem:[%s491_s4] sm:$0xff]   ;;  %307 = vmatprep.subr.bf16.mxu0 %v367_v1  ;;  %315 = vmatprep.subr.bf16.mxu1 %v367_v1  ;;  %v335_v2 = vld [vmem:[%s491_s4 + $0x8] sm:$0xff]  }
   0x2   :  { %308 = vmatpush3.bf16.msra.mxu0 %v334_v0  ;;  %311 = vmatprep.mubr.msk.bf16.mxu0 %vm368_vm0, %v367_v1  ;;  %v41_v3 = vld [vmem:[%s488_s1] sm:$0x3] }
   0x3   :  { %v42_v4 = vld [vmem:[%s489_s2] sm:$0x3]  ;;  %309 = vmatprep.subr.bf16.mxu0 %v367_v1  ;;  %333 = vset.pattern.permute.xlu0 %v369_v5  ;;  %v44_v6 = vpack.c.bf16 %v41_v3, %v41_v3 }
   0x4   :  { %52 = vperm.xlu0 %333, %v42_v4   ;;  %319 = vmatprep.mubr.msk.bf16.mxu1 %vm368_vm0, %v367_v1 }
   0x5   :  { %17 = vsyncpa [#allocation4], 0  ;;  %vm74_vm1 = vcmask 261120   ;;  %v336_v7 = vld [vmem:[%s494_s7] sm:$0xff]   ;;  %v337_v8 = vld [vmem:[%s494_s7 + $0x8] sm:$0xff]   ;;  %vm211_vm2 = vcmask 130048   ;;  %v266_v42 = vstv %s487_s0 }
   0x6   :  { %310 = vmatpush3.bf16.msra.mxu0 %v335_v2  ;;  %316 = vmatpush3.bf16.msra.mxu1 %v336_v7  ;;  %v338_v9 = vld [vmem:[%s496_s9] sm:$0xff]   ;;  %s263_s16 = ssub.f32 1.0, %s487_s0  ;;  %s370_s18 = smov [#allocation3]  }
   0x7   :  { %323 = vmatprep.subr.bf16.mxu0 %v367_v1  ;;  %317 = vmatprep.subr.bf16.mxu1 %v367_v1  ;;  %v286_v10 = vld [vmem:[%s492_s5] ss:$0 sm:$0xff]  ;;  %s278_s19 = sshll.u32 %s370_s18, 4  ;;  %s279_s19 = int_to_ptr.vmem [resolvable:$true] %s278_s19 }
   0x8   :  { %v290_v14 = vld [vmem:[%s493_s6] ss:$0 sm:$0xff]  ;;  %v264_v41 = vstv %s263_s16  ;;  %p348_p1 = scmp.lt.s32.totalorder %s279_s19, %s279_s19 }
   0x9   :  { %312 = vmatmul.mubr.msk.bf16.vlgmr.msra.gmra.mrb[0].mxu0 %vm74_vm1, %v44_v6  ;;  %v291_v22 = vld [vmem:[%s495_s8] ss:$0 sm:$0xff] }
   0xa   :  { %325 = vmatprep.mubr.msk.bf16.mxu0 %vm368_vm0, %v367_v1  ;;  %318 = vmatpush3.bf16.msra.mxu1 %v337_v8  ;;  %v295_v30 = vld [vmem:[%s497_s10] ss:$0 sm:$0xff] }
   0xb   :  { %324 = vmatpush3.bf16.msra.mxu0 %v338_v9  ;;  %v261_v39 = vld [vmem:[%s490_s3] sm:$0x3]  ;;  %s343_s3 = scalar_lea.vmem %s279_s19, 32 }
   0xc   :  { %v262_v40 = vmul.f32 0.95, %v261_v39  ;;  %p344_p0 = scmp.ne.s32.totalorder %s279_s19, %s343_s3  ;;  %p349_p2 = scmp.lt.s32.totalorder %s343_s3, %s343_s3 }
   0xe   :  { %v265_v43 = vmul.f32 %v264_v41, %v262_v40  ;;  %p350_p3 = por %p349_p2, %p348_p1 }
  0x10   :  { %p351_p4 = pnand %p350_p3, %p344_p0 }
  0x83   :  { %v53_v11 = vpop.permute.xlu0 %52 }
  0x84   :  { %v61_v12 = vmul.f32 %v286_v10, %v53_v11 }
  0xdc   :  { %v112_v13 = vpop.f32.mrb[0].mxu0 }
  0xdd   :  { %v113_v15 = vadd.f32 %v112_v13, %v61_v12  ;;  %v313_v16 = vpop.f32.mrb[1].mxu0 }
  0xde   :  { %v115_v17 = vpop.f32.mrb[2].mxu0 }
  0xdf   :  { %v125_v18 = vadd.f32 %v290_v14, %v113_v15  ;;  %v314_v19 = vpop.f32.mrb[3].mxu0 }
  0xe1   :  { %v126_v20 = vmax.f32 %v125_v18, 0.0 }
  0xe3   :  { %v127_v21 = vpack.c.bf16 %v126_v20, %v126_v20 }
  0xe5   :  { %320 = vmatmul.mubr.msk.bf16.vlgmr.msra.gmra.mrb[0].mxu1 %vm74_vm1, %v127_v21 }
 0x1b8   :  { %v188_v23 = vpop.f32.mrb[0].mxu1 }
 0x1b9   :  { %v189_v24 = vadd.f32 %v291_v22, %v188_v23  ;;  %v321_v25 = vpop.f32.mrb[1].mxu1 }
 0x1ba   :  { %v191_v26 = vpop.f32.mrb[2].mxu1 }
 0x1bb   :  { %v194_v27 = vmax.f32 %v189_v24, 0.0  ;;  %v322_v28 = vpop.f32.mrb[3].mxu1 }
 0x1bd   :  { %v195_v29 = vpack.c.bf16 %v194_v27, %v194_v27 }
 0x1bf   :  { %326 = vmatmul.mubr.msk.bf16.vlgmr.msra.gmra.mrb[4].mxu0 %vm211_vm2, %v195_v29 }
 0x292   :  { %v249_v31 = vpop.f32.mrb[4].mxu0 }
 0x293   :  { %v250_v32 = vadd.f32 %v295_v30, %v249_v31  ;;  %v327_v33 = vpop.f32.mrb[5].mxu0 }
 0x294   :  { %v252_v34 = vpop.f32.mrb[6].mxu0 }
 0x295   :  { %v298_v35 = vmul.f32 -1.442695, %v250_v32  ;;  %v328_v36 = vpop.f32.mrb[7].mxu0 }
 0x297   :  { %339 = vpow2.f32 %v298_v35 }
 0x2a1   :  { %v340_v37 = vpop.eup %339 }
 0x2a2   :  { %v258_v38 = vadd.f32 1.0, %v340_v37 }
 0x2a4   :  { %341 = vrcp.f32 %v258_v38 }
 0x2ae   :  { %v342_v44 = vpop.eup %341 }
 0x2af   :  { %v267_v45 = vmul.f32 %v342_v44, %v266_v42 }
 0x2b1   :  { %v268_v46 = vadd.f32 %v267_v45, %v265_v43 }
 0x2b3   :  { %v269_v47 = vmax.f32 %v268_v46, 0.2 }
 0x2b5   :  { %v270_v48 = vmin.f32 %v269_v47, 0.8 }
 0x2b7   :  { %271 = vst [vmem:[#allocation3] sm:$0x3] %v270_v48 }
 0x2b8   :  { %354 = shalt.err (!%p351_p4)
}
 0x2b9   :  { %s355_s0 = scalar_lea.hbm %s498_s11, 32 }
 0x2ba   :  { %p356_p5 = scmp.ne.s32.totalorder %s498_s11, %s355_s0  ;;  %p359_p6 = scmp.lt.u32.totalorder %s355_s0, %s498_s11 }
 0x2bc   :  { %p361_p7 = pnand %p359_p6, %p356_p5 }
 0x2be   :  { %364 = shalt.err (!%p361_p7)
}
 0x2bf   :  { %281 = dma.vmem_to_hbm [thread:$0]  %s279_s19, 32, %s498_s11, [#allocation4]  }
 0x2c0   :  { %365 = dma.done.wait [#allocation4], 32  }
 0x2c1   :  { %366 = vsyncadd [#allocation4], 4294967264 }
 0x2c2   :  { %285 = vsyncpa [#allocation4], 1 }

</bundles_post_ra>
